<compile_context>
chip_gen: v7x
topology: tpu7x:2x2x1
jax: 0.10.0
libtpu: 0.0.40
codegen_flags: <defaults>
</compile_context>

<pallas_src>
import jax
import jax.numpy as jnp
from jax.experimental import pallas as pl
from jax.experimental.pallas import tpu as pltpu

_LANE = 128


def _round_up(n, m):
    return ((n + m - 1) // m) * m


def _cdiv(a, b):
    return -(-a // b)


def _pad_to(a, shape):
    pads = [(0, s - d) for d, s in zip(a.shape, shape)]
    if all(p == (0, 0) for p in pads):
        return a
    return jnp.pad(a, pads)


def prepare_params(w1, b1, w2, b2):
    """One-time parameter prep (hoisted out of the forward path).

    Weights stored (in, out) so the kernel computes x @ W + b.  Hidden and
    class dims are zero-padded to 128 lanes (exact: zero cols + zero bias ->
    ReLU(0)=0 -> zero fc2 contribution); weights cast to bf16 for the MXU,
    biases kept f32 for the VPU bias/ReLU path.
    """
    D, H = w1.shape
    C = w2.shape[1]
    Hp = _round_up(H, _LANE)
    Cp = _round_up(C, _LANE)
    w1p = _pad_to(w1, (D, Hp)).astype(jnp.bfloat16)
    b1p = _pad_to(b1.reshape(1, H), (1, Hp)).astype(jnp.float32)
    w2p = _pad_to(w2, (Hp, Cp)).astype(jnp.bfloat16)
    b2p = _pad_to(b2.reshape(1, C), (1, Cp)).astype(jnp.float32)
    return w1p, b1p, w2p, b2p


def mlp_kernel(x_ref, w1_ref, b1_ref, w2_ref, b2_ref, o_ref):
    # Cast x f32 -> bf16 in-kernel (VPU has plenty of slack; avoids a separate
    # cast kernel and an extra HBM round-trip for x).
    x = x_ref[...].astype(jnp.bfloat16)
    # fc1 on the MXU, f32 accumulation.
    h = jnp.dot(x, w1_ref[...], preferred_element_type=jnp.float32)
    # Bias + ReLU in f32 on the VPU (v5e-safe, no bf16 elementwise needed).
    h = jnp.maximum(h + b1_ref[...], 0.0)
    # fc2 on the MXU, f32 accumulation; bf16 writeback (halves output bytes).
    out = jnp.dot(h.astype(jnp.bfloat16), w2_ref[...],
                  preferred_element_type=jnp.float32)
    o_ref[...] = (out + b2_ref[...]).astype(o_ref.dtype)


def mlp_forward(x, params, *, num_classes, batch_tile=1024):
    w1p, b1p, w2p, b2p = params
    B, D = x.shape
    Hp = w1p.shape[1]
    Cp = w2p.shape[1]

    flops = 2 * B * (D * Hp + Hp * Cp)
    bytes_accessed = (x.size * 4 + w1p.size * 2 + w2p.size * 2
                      + b1p.size * 4 + b2p.size * 4 + B * Cp * 2)
    cost = pl.CostEstimate(flops=flops, transcendentals=0,
                           bytes_accessed=bytes_accessed)

    if B <= batch_tile:
        # ---- Single-block path: one launch, everything VMEM-resident. ----
        out_p = pl.pallas_call(
            mlp_kernel,
            out_shape=jax.ShapeDtypeStruct((B, Cp), jnp.bfloat16),
            in_specs=[pl.BlockSpec(memory_space=pltpu.MemorySpace.VMEM)] * 5,
            out_specs=pl.BlockSpec(memory_space=pltpu.MemorySpace.VMEM),
            cost_estimate=cost,
        )(x, w1p, b1p, w2p, b2p)
    else:
        # ---- Batch-tiled path: weights resident, batch axis parallel. ----
        tile = _round_up(batch_tile, 16)
        n_steps = max(2, _cdiv(B, tile))            # >= 2 steps for v7x megacore
        TB = min(tile, _round_up(_cdiv(B, n_steps), 16))
        grid = (_cdiv(B, TB),)                      # partial last block is masked
        out_p = pl.pallas_call(
            mlp_kernel,
            out_shape=jax.ShapeDtypeStruct((B, Cp), jnp.bfloat16),
            grid=grid,
            in_specs=[
                pl.BlockSpec((TB, D), lambda i: (i, 0)),   # x: tiled over batch
                pl.BlockSpec((D, Hp), lambda i: (0, 0)),   # w1: VMEM-resident
                pl.BlockSpec((1, Hp), lambda i: (0, 0)),   # b1: VMEM-resident
                pl.BlockSpec((Hp, Cp), lambda i: (0, 0)),  # w2: VMEM-resident
                pl.BlockSpec((1, Cp), lambda i: (0, 0)),   # b2: VMEM-resident
            ],
            out_specs=pl.BlockSpec((TB, Cp), lambda i: (i, 0)),
            compiler_params=pltpu.CompilerParams(
                dimension_semantics=("parallel",)),
            cost_estimate=cost,
        )(x, w1p, b1p, w2p, b2p)

    # Single tiny fused slice+cast back to (B, C) f32 logits.
    return out_p[:, :num_classes].astype(jnp.float32)


if __name__ == "__main__":
    # Shapes consistent with the module: input_size=16 features,
    # hidden_size=64, num_classes=2, batch=8.
    batch = 8
    input_size = 16
    hidden_size = 64
    num_classes = 2

    key = jax.random.PRNGKey(0)
    kx, kw1, kb1, kw2, kb2 = jax.random.split(key, 5)

    x = jax.random.normal(kx, (batch, input_size), dtype=jnp.float32)

    # Deterministic parameter init (Kaiming-uniform-ish bounds like PyTorch),
    # stored as (in, out) = W.T of the PyTorch (out, in) layout.
    lim1 = 1.0 / jnp.sqrt(input_size)
    lim2 = 1.0 / jnp.sqrt(hidden_size)
    w1 = jax.random.uniform(kw1, (input_size, hidden_size), jnp.float32, -lim1, lim1)
    b1 = jax.random.uniform(kb1, (hidden_size,), jnp.float32, -lim1, lim1)
    w2 = jax.random.uniform(kw2, (hidden_size, num_classes), jnp.float32, -lim2, lim2)
    b2 = jax.random.uniform(kb2, (num_classes,), jnp.float32, -lim2, lim2)

    # Hoisted, one-time parameter prep (padding + bf16 cast).
    params = prepare_params(w1, b1, w2, b2)

    fwd = jax.jit(mlp_forward, static_argnames=("num_classes", "batch_tile"))

    def ref_fn(xv):
        # Emulate the kernel's bf16-input / f32-accumulate / bf16-output math.
        xr = xv.astype(jnp.bfloat16).astype(jnp.float32)
        w1r = w1.astype(jnp.bfloat16).astype(jnp.float32)
        w2r = w2.astype(jnp.bfloat16).astype(jnp.float32)
        h = jnp.maximum(xr @ w1r + b1, 0.0)
        out = h.astype(jnp.bfloat16).astype(jnp.float32) @ w2r + b2
        return out.astype(jnp.bfloat16).astype(jnp.float32)

    # 1) Small batch -> single-block, no-grid, single-launch VMEM path.
    out = jax.block_until_ready(fwd(x, params, num_classes=num_classes))
    assert out.shape == (batch, num_classes)
    assert jnp.allclose(out, ref_fn(x), atol=1e-2, rtol=1e-2)

    # 2) Larger ragged batch -> batch-tiled grid path (>=2 steps, weights
    #    resident, parallel batch axis, masked partial last block).
    big_batch = 1480
    x_big = jax.random.normal(jax.random.PRNGKey(1), (big_batch, input_size),
                              dtype=jnp.float32)
    out_big = jax.block_until_ready(
        fwd(x_big, params, num_classes=num_classes, batch_tile=512))
    assert out_big.shape == (big_batch, num_classes)
    assert jnp.allclose(out_big, ref_fn(x_big), atol=1e-2, rtol=1e-2)

    print("KERNEL_OK")
</pallas_src>

<mosaic_0001>
module attributes {stable_mosaic.version = 11 : i64} {
  func.func @mlp_kernel(%arg0: memref<8x16xf32, #tpu.memory_space<vmem>>, %arg1: memref<16x128xbf16, #tpu.memory_space<vmem>>, %arg2: memref<1x128xf32, #tpu.memory_space<vmem>>, %arg3: memref<128x128xbf16, #tpu.memory_space<vmem>>, %arg4: memref<1x128xf32, #tpu.memory_space<vmem>>, %arg5: memref<8x128xbf16, #tpu.memory_space<vmem>>) attributes {dimension_semantics = [], scalar_prefetch = 0 : i64, scratch_operands = 0 : i64, tpu.core_type = #tpu.core_type<tc>} {
    %c0 = arith.constant 0 : index
    %c0_0 = arith.constant 0 : index
    %0 = vector.load %arg0[%c0, %c0_0] : memref<8x16xf32, #tpu.memory_space<vmem>>, vector<8x16xf32>
    %1 = arith.truncf %0 : vector<8x16xf32> to vector<8x16xbf16>
    %c0_1 = arith.constant 0 : index
    %c0_2 = arith.constant 0 : index
    %2 = vector.load %arg1[%c0_1, %c0_2] : memref<16x128xbf16, #tpu.memory_space<vmem>>, vector<16x128xbf16>
    %cst = arith.constant dense<0.000000e+00> : vector<8x128xf32>
    %3 = tpu.matmul %1, %2, %cst {dimension_numbers = #tpu.dot_dimension_numbers<[1], [0], [0], [1], [0, 0, 1, 1], [], []>} : vector<8x16xbf16>, vector<16x128xbf16>, vector<8x128xf32> -> vector<8x128xf32>
    %c0_3 = arith.constant 0 : index
    %c0_4 = arith.constant 0 : index
    %4 = vector.load %arg2[%c0_3, %c0_4] : memref<1x128xf32, #tpu.memory_space<vmem>>, vector<1x128xf32>
    %5 = vector.broadcast %4 : vector<1x128xf32> to vector<8x128xf32>
    %6 = arith.addf %3, %5 : vector<8x128xf32>
    %cst_5 = arith.constant 0.000000e+00 : f32
    %7 = vector.broadcast %cst_5 : f32 to vector<8x128xf32>
    %8 = arith.maximumf %6, %7 : vector<8x128xf32>
    %9 = arith.truncf %8 : vector<8x128xf32> to vector<8x128xbf16>
    %c0_6 = arith.constant 0 : index
    %c0_7 = arith.constant 0 : index
    %10 = vector.load %arg3[%c0_6, %c0_7] : memref<128x128xbf16, #tpu.memory_space<vmem>>, vector<128x128xbf16>
    %cst_8 = arith.constant dense<0.000000e+00> : vector<8x128xf32>
    %11 = tpu.matmul %9, %10, %cst_8 {dimension_numbers = #tpu.dot_dimension_numbers<[1], [0], [0], [1], [0, 0, 1, 1], [], []>} : vector<8x128xbf16>, vector<128x128xbf16>, vector<8x128xf32> -> vector<8x128xf32>
    %c0_9 = arith.constant 0 : index
    %c0_10 = arith.constant 0 : index
    %12 = vector.load %arg4[%c0_9, %c0_10] : memref<1x128xf32, #tpu.memory_space<vmem>>, vector<1x128xf32>
    %13 = vector.broadcast %12 : vector<1x128xf32> to vector<8x128xf32>
    %14 = arith.addf %11, %13 : vector<8x128xf32>
    %15 = arith.truncf %14 : vector<8x128xf32> to vector<8x128xbf16>
    %c0_11 = arith.constant 0 : index
    %c0_12 = arith.constant 0 : index
    %16 = vector.load %arg5[%c0_11, %c0_12] : memref<8x128xbf16, #tpu.memory_space<vmem>>, vector<8x128xbf16>
    tpu.vector_store %arg5[%c0_11, %c0_12], %15 {strides = array<i32>} : memref<8x128xbf16, #tpu.memory_space<vmem>>, vector<8x128xbf16>,
    return
  }
}

</mosaic_0001>

<bundles_post_ra>
// kernel: mlp_forward.1
= control target key start
LH: loop header
LB: loop body
LE: loop exit
PB: predicated region body
PF: predicated region fallthrough
CT: control target
= control target key end

     0   :  { %10 = vsyncpa [#allocation3], 0  ;;  %s465_s0 = inlined_call_operand.hbm [shape: f32[8,16], index: 0, kind: input, shape index: {}]   ;;  %s466_s1 = inlined_call_operand.hbm [shape: bf16[16,128], index: 1, kind: input, shape index: {}]   ;;  %s467_s2 = inlined_call_operand.vmem [shape: f32[1,128], index: 2, kind: input, shape index: {}]   ;;  %s468_s3 = inlined_call_operand.hbm [shape: bf16[128,128], index: 3, kind: input, shape index: {}]   ;;  %s469_s4 = inlined_call_operand.vmem [shape: f32[1,128], index: 4, kind: input, shape index: {}]   ;;  %s470_s5 = inlined_call_operand.vmem [shape: bf16[8,128], index: 5, kind: output, shape index: {}]  }
   0x1   :  { %11 = vsyncpa [#allocation5], 0  ;;  %s377_s18 = smov [#allocation4]   ;;  %s307_s22 = scalar_lea.hbm %s466_s1, 128 }
   0x2   :  { %s27_s19 = sshll.u32 %s377_s18, 4  ;;  %p308_p0 = scmp.ne.s32.totalorder %s466_s1, %s307_s22  ;;  %s28_s19 = int_to_ptr.vmem [resolvable:$true] %s27_s19 }
   0x3   :  { %p311_p1 = scmp.lt.u32.totalorder %s307_s22, %s466_s1 }
   0x5   :  { %p313_p2 = pnand %p311_p1, %p308_p0 }
   0x7   :  { %316 = shalt.err (!%p313_p2)
}
   0x8   :  { %s317_s27 = scalar_lea.vmem %s28_s19, 128  ;;  %p322_p4 = scmp.lt.s32.totalorder %s28_s19, %s28_s19 }
   0x9   :  { %p318_p3 = scmp.ne.s32.totalorder %s28_s19, %s317_s27  ;;  %p323_p5 = scmp.lt.s32.totalorder %s317_s27, %s317_s27 }
   0xb   :  { %p324_p6 = por %p323_p5, %p322_p4 }
   0xd   :  { %p325_p7 = pnand %p324_p6, %p318_p3 }
   0xf   :  { %328 = shalt.err (!%p325_p7)
}
  0x10   :  { %s378_s28 = smov 64   ;;  %s379_s29 = smov 4  }
  0x11   :  { %33 = dma.hbm_to_vmem [thread:$0]  %s466_s1, 128, %s28_s19, [#allocation5], %s378_s28, %s378_s28, %s379_s29  }
  0x12   :  { %s380_s7 = smov [#allocation2]   ;;  %s381_s9 = smov [#allocation6]  }
  0x13   :  { %s18_s8 = sshll.u32 %s380_s7, 4  ;;  %s41_s10 = sshll.u32 %s381_s9, 4  ;;  %s19_s8 = int_to_ptr.vmem [resolvable:$true] %s18_s8  ;;  %s42_s10 = int_to_ptr.vmem [resolvable:$true] %s41_s10 }
  0x14   :  { %s329_s13 = scalar_lea.hbm %s465_s0, 128 }
  0x15   :  { %p330_p8 = scmp.ne.s32.totalorder %s465_s0, %s329_s13  ;;  %p333_p9 = scmp.lt.u32.totalorder %s329_s13, %s465_s0 }
  0x17   :  { %p335_p10 = pnand %p333_p9, %p330_p8 }
  0x19   :  { %338 = shalt.err (!%p335_p10)
}
  0x1a   :  { %s339_s1 = scalar_lea.vmem %s19_s8, 128  ;;  %p344_p12 = scmp.lt.s32.totalorder %s19_s8, %s19_s8 }
  0x1b   :  { %p340_p11 = scmp.ne.s32.totalorder %s19_s8, %s339_s1  ;;  %p345_p13 = scmp.lt.s32.totalorder %s339_s1, %s339_s1 }
  0x1d   :  { %p346_p0 = por %p345_p13, %p344_p12 }
  0x1f   :  { %p347_p1 = pnand %p346_p0, %p340_p11 }
  0x21   :  { %350 = shalt.err (!%p347_p1)
}
  0x22   :  { %21 = dma.hbm_to_vmem [thread:$0]  %s465_s0, 128, %s19_s8, [#allocation3]  }
  0x23   :  { %s351_s22 = scalar_lea.hbm %s468_s3, 1024 }
  0x24   :  { %p352_p2 = scmp.ne.s32.totalorder %s468_s3, %s351_s22  ;;  %p355_p3 = scmp.lt.u32.totalorder %s351_s22, %s468_s3 }
  0x26   :  { %p357_p4 = pnand %p355_p3, %p352_p2 }
  0x28   :  { %360 = shalt.err (!%p357_p4)
}
  0x29   :  { %s361_s27 = scalar_lea.vmem %s42_s10, 1024  ;;  %p366_p6 = scmp.lt.s32.totalorder %s42_s10, %s42_s10 }
  0x2a   :  { %p362_p5 = scmp.ne.s32.totalorder %s42_s10, %s361_s27  ;;  %p367_p7 = scmp.lt.s32.totalorder %s361_s27, %s361_s27 }
  0x2c   :  { %p368_p8 = por %p367_p7, %p366_p6 }
  0x2e   :  { %p369_p9 = pnand %p368_p8, %p362_p5 }
  0x30   :  { %372 = shalt.err (!%p369_p9)
}
  0x31   :  { %47 = dma.hbm_to_vmem [thread:$0]  %s468_s3, 1024, %s42_s10, [#allocation5], %s378_s28, %s378_s28, %s379_s29  }
  0x32   :  { %373 = dma.done.wait [#allocation3], 128  }
  0x33   :  { %374 = vsyncadd [#allocation3], 4294967168 }
  0x34   :  { %375 = dma.done.wait [#allocation5], 1152  }
  0x35   :  { %376 = vsyncadd [#allocation5], 4294966144  ;;  %v382_v0 = vmov 0.0   ;;  %vm383_vm0 = vmmov 0   ;;  %v298_v1 = vld [vmem:[#allocation4] sm:$0xff]   ;;  %v60_v2 = vld [vmem:[#allocation2] sm:$0xff] }
  0x36   :  { %265 = vmatprep.subr.bf16.mxu0 %v382_v0  ;;  %267 = vmatprep.mubr.msk.bf16.mxu0 %vm383_vm0, %v382_v0  ;;  %v61_v3 = vpack.c.bf16 %v60_v2, %v60_v2  ;;  %vm77_vm1 = vcmask 130048   ;;  %v299_v4 = vld [vmem:[#allocation6] sm:$0xff]   ;;  %v300_v5 = vld [vmem:[#allocation6 + $0x8] sm:$0xff]   ;;  %v301_v6 = vld [vmem:[#allocation6 + $0x10] sm:$0xff]  }
  0x37   :  { %271 = vmatprep.subr.bf16.mxu1 %v382_v0  ;;  %287 = vmatprep.mubr.msk.bf16.mxu1 %vm383_vm0, %v382_v0  ;;  %v302_v7 = vld [vmem:[#allocation6 + $0x18] sm:$0xff]   ;;  %v303_v8 = vld [vmem:[#allocation6 + $0x20] sm:$0xff]   ;;  %v304_v9 = vld [vmem:[#allocation6 + $0x28] sm:$0xff]  }
  0x38   :  { %266 = vmatpush3.bf16.msra.mxu0 %v298_v1  ;;  %272 = vmatpush3.bf16.msra.mxu1 %v299_v4  ;;  %v305_v10 = vld [vmem:[#allocation6 + $0x30] sm:$0xff]   ;;  %v306_v11 = vld [vmem:[#allocation6 + $0x38] sm:$0xff]  }
  0x39   :  { %273 = vmatprep.subr.bf16.mxu1 %v382_v0  ;;  %v242_v12 = vld [vmem:[%s467_s2] ss:$0 sm:$0xff] }
  0x3a   :  { %v245_v20 = vld [vmem:[%s469_s4] ss:$0 sm:$0xff] }
  0x3b   :  { %268 = vmatmul.mubr.msk.bf16.vlgmr.msra.gmra.mrb[0].mxu0 %vm77_vm1, %v61_v3 }
  0x3c   :  { %274 = vmatpush3.bf16.msra.mxu1 %v300_v5 }
  0x3d   :  { %275 = vmatprep.subr.bf16.mxu1 %v382_v0 }
  0x40   :  { %276 = vmatpush3.bf16.msra.mxu1 %v301_v6 }
  0x41   :  { %277 = vmatprep.subr.bf16.mxu1 %v382_v0 }
  0x44   :  { %278 = vmatpush3.bf16.msra.mxu1 %v302_v7 }
  0x45   :  { %279 = vmatprep.subr.bf16.mxu1 %v382_v0 }
  0x48   :  { %280 = vmatpush3.bf16.msra.mxu1 %v303_v8 }
  0x49   :  { %281 = vmatprep.subr.bf16.mxu1 %v382_v0 }
  0x4c   :  { %282 = vmatpush3.bf16.msra.mxu1 %v304_v9 }
  0x4d   :  { %283 = vmatprep.subr.bf16.mxu1 %v382_v0 }
  0x50   :  { %284 = vmatpush3.bf16.msra.mxu1 %v305_v10 }
  0x51   :  { %285 = vmatprep.subr.bf16.mxu1 %v382_v0 }
  0x54   :  { %286 = vmatpush3.bf16.msra.mxu1 %v306_v11 }
 0x10e   :  { %v115_v13 = vpop.f32.mrb[0].mxu0 }
 0x10f   :  { %v116_v14 = vadd.f32 %v242_v12, %v115_v13  ;;  %v269_v15 = vpop.f32.mrb[1].mxu0 }
 0x110   :  { %v118_v16 = vpop.f32.mrb[2].mxu0 }
 0x111   :  { %v121_v17 = vmax.f32 %v116_v14, 0.0  ;;  %v270_v18 = vpop.f32.mrb[3].mxu0 }
 0x113   :  { %v122_v19 = vpack.c.bf16 %v121_v17, %v121_v17 }
 0x115   :  { %288 = vmatmul.mubr.bf16.vlgmr.msra.gmra.mrb[0].mxu1 %v122_v19 }
 0x1e8   :  { %v228_v21 = vpop.f32.mrb[0].mxu1 }
 0x1e9   :  { %v229_v22 = vadd.f32 %v245_v20, %v228_v21  ;;  %v289_v23 = vpop.f32.mrb[1].mxu1 }
 0x1ea   :  { %v231_v24 = vpop.f32.mrb[2].mxu1 }
 0x1eb   :  { %v234_v25 = vpack.c.bf16 %v229_v22, %v229_v22  ;;  %v290_v26 = vpop.f32.mrb[3].mxu1 }
 0x1ed   :  { %235 = vst [vmem:[%s470_s5] sm:$0xf] %v234_v25 }
 0x1ee   :  { %240 = vsyncpa [#allocation3], 1 }
 0x1ef   :  { %241 = vsyncpa [#allocation5], 1 }

</bundles_post_ra>
